<compile_context>
chip_gen: v7x
topology: tpu7x:2x2x1
jax: 0.10.0
libtpu: 0.0.40
codegen_flags: <defaults>
</compile_context>

<pallas_src>
import jax
import jax.numpy as jnp
import numpy as np
from jax import lax
from jax.experimental import pallas as pl
from jax.experimental.pallas import tpu as pltpu

# ----- static config (args) ---------------------------------------------------
NUM_FEATURES   = 64     # resnet20 feature dim (cifar100 branch)
NUM_CLASSES    = 100    # args.num_classes
PRETRAIN_CLASS = 60     # args.pretrain_class
TEMPERATURE    = 16.0   # args.temperature
EPS            = 1e-12  # F.normalize default eps

TILE_B = 8              # batch rows per grid step (sublane-aligned)
PAD_NC = 128            # lane-dense padded output width (>= NUM_CLASSES)


def cosine_head_kernel(feat_ref, wt_ref, o_ref):
    # feat_ref: [TILE_B, C]    pooled features (f32)
    # wt_ref  : [C, PAD_NC]    row-normalized, transposed, zero-padded weight
    # o_ref   : [TILE_B, PAD_NC]
    x = feat_ref[...].astype(jnp.float32)

    # F.normalize(feat):  x / max(||x||, eps) == x * rsqrt(max(||x||^2, eps^2))
    ssq = jnp.sum(x * x, axis=-1, keepdims=True)
    fn = x * lax.rsqrt(jnp.maximum(ssq, EPS * EPS))

    # Cosine logits: contraction on the last dim of fn / first dim of wt
    # (weight already transposed in the wrapper -> no in-kernel transpose).
    logits = jnp.dot(fn, wt_ref[...], preferred_element_type=jnp.float32)

    o_ref[...] = (TEMPERATURE * logits).astype(o_ref.dtype)


def mynet_forward(feat_map_nchw, fc_weight, dummy_weight):
    """MYNET.forward starting from the encoder feature map (NCHW).

    feat_map_nchw : [B, C, H, W]  encoder output
    fc_weight     : [num_classes, C]                      (self.fc.weight)
    dummy_weight  : [num_classes - pretrain_class, C]     (dummy classifier weight)
    """
    B = feat_map_nchw.shape[0]
    NC, C = fc_weight.shape

    # --- hoisted, batch-cheap prep (still executed per call: same semantics) ---
    # adaptive_avg_pool2d(x, 1).squeeze() == spatial mean; done on NCHW so no
    # transpose copy is needed and the kernel input DMA is just [B, C].
    feat = jnp.mean(feat_map_nchw.astype(jnp.float32), axis=(2, 3))          # [B, C]

    # cat([x1[:, :PRE], x2], 1) == normalize(feat) @ normalize(cat(fc[:PRE], dummy)).T
    w_comb = jnp.concatenate(
        [fc_weight[:PRETRAIN_CLASS], dummy_weight], axis=0).astype(jnp.float32)  # [NC, C]
    wn = w_comb / jnp.maximum(
        jnp.linalg.norm(w_comb, axis=-1, keepdims=True), EPS)                # [NC, C]
    # pre-transpose to [C, NC], zero-pad lanes to 128 for unmasked stores
    wt = jnp.zeros((C, PAD_NC), jnp.float32).at[:, :NC].set(wn.T)            # [C, 128]

    # pad batch to a sublane-aligned multiple of TILE_B (zero rows stay zero)
    n_tiles = pl.cdiv(B, TILE_B)
    b_pad = n_tiles * TILE_B
    feat_p = jnp.zeros((b_pad, C), jnp.float32).at[:B, :].set(feat)

    out = pl.pallas_call(
        cosine_head_kernel,
        out_shape=jax.ShapeDtypeStruct((b_pad, PAD_NC), jnp.float32),
        grid=(n_tiles,),
        in_specs=[
            pl.BlockSpec((TILE_B, C), lambda i: (i, 0)),
            pl.BlockSpec((C, PAD_NC), lambda i: (0, 0)),
        ],
        out_specs=pl.BlockSpec((TILE_B, PAD_NC), lambda i: (i, 0)),
        compiler_params=pltpu.CompilerParams(
            dimension_semantics=("parallel",)),
    )(feat_p, wt)

    return out[:B, :NC]


def mynet_forward_ref(feat_map_nchw, fc_weight, dummy_weight):
    """Pure-JAX reference mirroring the PyTorch code path exactly."""
    feat = jnp.mean(feat_map_nchw, axis=(2, 3))
    fn = feat / jnp.maximum(jnp.linalg.norm(feat, axis=-1, keepdims=True), EPS)
    wn = fc_weight / jnp.maximum(
        jnp.linalg.norm(fc_weight, axis=-1, keepdims=True), EPS)
    x1 = fn @ wn.T
    dn = dummy_weight / jnp.maximum(
        jnp.linalg.norm(dummy_weight, axis=-1, keepdims=True), EPS)
    x2 = fn @ dn.T
    return TEMPERATURE * jnp.concatenate([x1[:, :PRETRAIN_CLASS], x2], axis=1)


if __name__ == "__main__":
    key = jax.random.PRNGKey(0)
    k_feat, k_fc = jax.random.split(key)

    # Encoder output feature map for cifar100/resnet20: [B, 64, 8, 8]
    B, C, H, W = 2, NUM_FEATURES, 8, 8
    feat_map = jax.random.normal(k_feat, (B, C, H, W), dtype=jnp.float32)

    # nn.init.orthogonal_(fc.weight) -> semi-orthogonal [num_classes, num_features]
    g = jax.random.normal(k_fc, (NUM_CLASSES, NUM_FEATURES), dtype=jnp.float32)
    fc_weight, _ = jnp.linalg.qr(g)
    fc_weight = fc_weight.astype(jnp.float32)

    # dummy_orthogonal_classifier.weight = fc.weight[pretrain_class:, :]
    # (passed as a separate argument so the API also covers the case where it
    #  is maintained independently of fc.weight)
    dummy_weight = fc_weight[PRETRAIN_CLASS:, :]

    out = mynet_forward(feat_map, fc_weight, dummy_weight)
    out = jax.block_until_ready(out)

    ref = mynet_forward_ref(feat_map, fc_weight, dummy_weight)
    np.testing.assert_allclose(np.asarray(out), np.asarray(ref),
                               rtol=1e-4, atol=1e-4)
    assert out.shape == (B, NUM_CLASSES)

    print("KERNEL_OK")
</pallas_src>

<mosaic_0001>
module attributes {stable_mosaic.version = 11 : i64} {
  func.func @cosine_head_kernel(%arg0: i32, %arg1: memref<8x64xf32, #tpu.memory_space<vmem>>, %arg2: memref<64x128xf32, #tpu.memory_space<vmem>>, %arg3: memref<8x128xf32, #tpu.memory_space<vmem>>) attributes {dimension_semantics = [#tpu.dimension_semantics<parallel>], iteration_bounds = array<i64: 1>, scalar_prefetch = 0 : i64, scratch_operands = 0 : i64, tpu.core_type = #tpu.core_type<tc>, window_params = [{transform_indices = @transform_0, window_bounds = array<i64: 8, 64>}, {pipeline_mode = #tpu.pipeline_mode<synchronous>, transform_indices = @transform_1, window_bounds = array<i64: 64, 128>}, {transform_indices = @transform_2, window_bounds = array<i64: 8, 128>}]} {
    %c0 = arith.constant 0 : index
    %c0_0 = arith.constant 0 : index
    %0 = vector.load %arg1[%c0, %c0_0] : memref<8x64xf32, #tpu.memory_space<vmem>>, vector<8x64xf32>
    %1 = arith.mulf %0, %0 : vector<8x64xf32>
    %cst = arith.constant dense<0.000000e+00> : vector<8xf32>
    %2 = vector.multi_reduction <add>, %1, %cst [1] : vector<8x64xf32> to vector<8xf32>
    %3 = vector.shape_cast %2 : vector<8xf32> to vector<8x1xf32>
    %cst_1 = arith.constant 1.000000e-24 : f32
    %4 = vector.broadcast %cst_1 : f32 to vector<8x1xf32>
    %5 = arith.maximumf %3, %4 : vector<8x1xf32>
    %6 = math.rsqrt %5 : vector<8x1xf32>
    %7 = vector.broadcast %6 : vector<8x1xf32> to vector<8x64xf32>
    %8 = arith.mulf %0, %7 : vector<8x64xf32>
    %c0_2 = arith.constant 0 : index
    %c0_3 = arith.constant 0 : index
    %9 = vector.load %arg2[%c0_2, %c0_3] : memref<64x128xf32, #tpu.memory_space<vmem>>, vector<64x128xf32>
    %cst_4 = arith.constant dense<0.000000e+00> : vector<8x128xf32>
    %10 = tpu.matmul %8, %9, %cst_4 {dimension_numbers = #tpu.dot_dimension_numbers<[1], [0], [0], [1], [0, 0, 1, 1], [], []>} : vector<8x64xf32>, vector<64x128xf32>, vector<8x128xf32> -> vector<8x128xf32>
    %cst_5 = arith.constant 1.600000e+01 : f32
    %11 = vector.broadcast %cst_5 : f32 to vector<8x128xf32>
    %12 = arith.mulf %11, %10 : vector<8x128xf32>
    %c0_6 = arith.constant 0 : index
    %c0_7 = arith.constant 0 : index
    %13 = vector.load %arg3[%c0_6, %c0_7] : memref<8x128xf32, #tpu.memory_space<vmem>>, vector<8x128xf32>
    tpu.vector_store %arg3[%c0_6, %c0_7], %12 {strides = array<i32>} : memref<8x128xf32, #tpu.memory_space<vmem>>, vector<8x128xf32>,
    return
  }
  func.func @transform_0(%arg0: i32) -> (i32, i32) {
    %c0_i32 = arith.constant 0 : i32
    %c0_i32_0 = arith.constant 0 : i32
    return %arg0, %c0_i32 : i32, i32
  }
  func.func @transform_1(%arg0: i32) -> (i32, i32) {
    %c0_i32 = arith.constant 0 : i32
    %c0_i32_0 = arith.constant 0 : i32
    %c0_i32_1 = arith.constant 0 : i32
    return %c0_i32, %c0_i32_0 : i32, i32
  }
  func.func @transform_2(%arg0: i32) -> (i32, i32) {
    %c0_i32 = arith.constant 0 : i32
    %c0_i32_0 = arith.constant 0 : i32
    return %arg0, %c0_i32 : i32, i32
  }
}

</mosaic_0001>

<bundles_post_ra>
// kernel: tpu_custom_call.1
= control target key start
LH: loop header
LB: loop body
LE: loop exit
PB: predicated region body
PF: predicated region fallthrough
CT: control target
= control target key end

     0   :  { %7 = vsyncpa [#allocation3], 0  ;;  %s337_s0 = inlined_call_operand.hbm [shape: f32[8,64], index: 0, kind: input, shape index: {}]   ;;  %s338_s1 = inlined_call_operand.hbm [shape: f32[64,128], index: 1, kind: input, shape index: {}]   ;;  %s339_s2 = inlined_call_operand.hbm [shape: f32[8,128], index: 2, kind: output, shape index: {}]  }
   0x1   :  { %8 = vsyncpa [#allocation6], 0 }
   0x2   :  { %9 = vsyncpa [#allocation4], 0  ;;  %s269_s9 = smov [#allocation2]   ;;  %s270_s11 = smov [#allocation5]  }
   0x3   :  { %s16_s10 = sshll.u32 %s269_s9, 4  ;;  %s25_s12 = sshll.u32 %s270_s11, 4  ;;  %s17_s10 = int_to_ptr.vmem [resolvable:$true] %s16_s10  ;;  %s292_s12 = int_to_ptr.vmem [resolvable:$true] %s25_s12 }
   0x4   :  { %s197_s15 = scalar_lea.hbm %s337_s0, 128 }
   0x5   :  { %p198_p0 = scmp.ne.s32.totalorder %s337_s0, %s197_s15  ;;  %p201_p1 = scmp.lt.u32.totalorder %s197_s15, %s337_s0 }
   0x7   :  { %p203_p2 = pnand %p201_p1, %p198_p0 }
   0x9   :  { %206 = shalt.err (!%p203_p2)
}
   0xa   :  { %s207_s20 = scalar_lea.vmem %s17_s10, 128  ;;  %p212_p4 = scmp.lt.s32.totalorder %s17_s10, %s17_s10 }
   0xb   :  { %p208_p3 = scmp.ne.s32.totalorder %s17_s10, %s207_s20  ;;  %p213_p5 = scmp.lt.s32.totalorder %s207_s20, %s207_s20 }
   0xd   :  { %p214_p6 = por %p213_p5, %p212_p4 }
   0xf   :  { %p215_p7 = pnand %p214_p6, %p208_p3 }
  0x11   :  { %218 = shalt.err (!%p215_p7)
}
  0x12   :  { %19 = dma.hbm_to_vmem [thread:$0]  %s337_s0, 128, %s17_s10, [#allocation3]  }
  0x13   :  { %s219_s25 = scalar_lea.hbm %s338_s1, 1024 }
  0x14   :  { %p220_p8 = scmp.ne.s32.totalorder %s338_s1, %s219_s25  ;;  %p223_p9 = scmp.lt.u32.totalorder %s219_s25, %s338_s1 }
  0x16   :  { %p225_p10 = pnand %p223_p9, %p220_p8 }
  0x18   :  { %228 = shalt.err (!%p225_p10)
}
  0x19   :  { %s229_s30 = scalar_lea.vmem %s292_s12, 1024  ;;  %p234_p12 = scmp.lt.s32.totalorder %s292_s12, %s292_s12 }
  0x1a   :  { %p230_p11 = scmp.ne.s32.totalorder %s292_s12, %s229_s30  ;;  %p235_p13 = scmp.lt.s32.totalorder %s229_s30, %s229_s30 }
  0x1c   :  { %p236_p0 = por %p235_p13, %p234_p12 }
  0x1e   :  { %p237_p1 = pnand %p236_p0, %p230_p11 }
  0x20   :  { %240 = shalt.err (!%p237_p1)
}
  0x21   :  { %s271_s0 = smov 128   ;;  %s272_s3 = smov 8  }
  0x22   :  { %31 = dma.hbm_to_vmem [thread:$0]  %s338_s1, 1024, %s292_s12, [#allocation6], %s271_s0, %s271_s0, %s272_s3  }
  0x23   :  { %263 = dma.done.wait [#allocation3], 128  }
  0x24   :  { %264 = vsyncadd [#allocation3], 4294967168 }
  0x25   :  { %265 = dma.done.wait [#allocation6], 1024  }
  0x26   :  { %266 = vsyncadd [#allocation6], 4294966272  ;;  %v38_v0 = vld [vmem:[#allocation2] sm:$0xff]  ;;  %vm40_vm0 = vcmask 523264   ;;  %v47_v3 = vld [vmem:[#allocation5] sm:$0xff]  ;;  %v273_v6 = vmov 0.0|0.0  }
  0x27   :  { %v39_v1 = vmul.f32 %v38_v0, %v38_v0  ;;  %v48_v4 = vld [vmem:[#allocation5 + $0x8] sm:$0xff]  ;;  %175 = vmatprep.subr.bf16.mxu0 %v273_v6  ;;  %v49_v7 = vld [vmem:[#allocation5 + $0x10] sm:$0xff]  ;;  %v50_v8 = vld [vmem:[#allocation5 + $0x18] sm:$0xff]  ;;  %vm274_vm1 = vmmov 0   ;;  %v275_v12 = vmov 0.0   ;;  %s276_s1 = smov [#allocation7]  }
  0x28   :  { %v176_v5 = vpack.c.bf16 %v48_v4, %v47_v3  ;;  %v179_v9 = vpack.c.bf16 %v50_v8, %v49_v7  ;;  %v51_v10 = vld [vmem:[#allocation5 + $0x20] sm:$0xff]  ;;  %v52_v11 = vld [vmem:[#allocation5 + $0x28] sm:$0xff]  ;;  %172 = vmatprep.mubr.msk.f32.mxu0 %vm274_vm1, %v275_v12  ;;  %v53_v14 = vld [vmem:[#allocation5 + $0x30] sm:$0xff]  ;;  %s136_s6 = sshll.u32 %s276_s1, 4  ;;  %s137_s6 = int_to_ptr.vmem [resolvable:$true] %s136_s6 }
  0x29   :  { %v41_v2 = vsel %vm40_vm0, %v39_v1, 0.0  ;;  %v182_v13 = vpack.c.bf16 %v52_v11, %v51_v10  ;;  %v54_v15 = vld [vmem:[#allocation5 + $0x38] sm:$0xff]  ;;  %s241_s7 = scalar_lea.vmem %s137_s6, 128  ;;  %p246_p3 = scmp.lt.s32.totalorder %s137_s6, %s137_s6 }
  0x2a   :  { %42 = vadd.xlane.f32.xlu0 %v41_v2  ;;  %177 = vmatpush3.bf16.msra.mxu0 %v176_v5  ;;  %v185_v16 = vpack.c.bf16 %v54_v15, %v53_v14  ;;  %p242_p2 = scmp.ne.s32.totalorder %s137_s6, %s241_s7  ;;  %p247_p4 = scmp.lt.s32.totalorder %s241_s7, %s241_s7 }
  0x2b   :  { %178 = vmatprep.subr.bf16.mxu0 %v273_v6 }
  0x2c   :  { %p248_p5 = por %p247_p4, %p246_p3 }
  0x2e   :  { %180 = vmatpush3.bf16.msra.mxu0 %v179_v9  ;;  %p249_p6 = pnand %p248_p5, %p242_p2 }
  0x2f   :  { %181 = vmatprep.subr.bf16.mxu0 %v273_v6 }
  0x32   :  { %183 = vmatpush3.bf16.msra.mxu0 %v182_v13 }
  0x33   :  { %184 = vmatprep.subr.bf16.mxu0 %v273_v6 }
  0x36   :  { %186 = vmatpush3.bf16.msra.mxu0 %v185_v16 }
  0xb7   :  { %v43_v17 = vpop.xlane.xlu0 %42 }
  0xb8   :  { %v44_v18 = vmax.f32 %v43_v17, 1e-24 }
  0xba   :  { %195 = vrsqrt.f32 %v44_v18 }
  0xc4   :  { %v196_v19 = vpop.eup %195 }
  0xc5   :  { %v46_v20 = vmul.f32 %v196_v19, %v38_v0 }
  0xc7   :  { %173 = vmatmul.mubr.msk.f32.vlgmr.msra.gmra.mrb[0].mxu0 %vm40_vm0, %v46_v20 }
 0x19a   :  { %v124_v21 = vpop.f32.mrb[0].mxu0 }
 0x19b   :  { %v128_v22 = vmul.f32 16.0, %v124_v21  ;;  %v174_v23 = vpop.f32.mrb[1].mxu0 }
 0x19d   :  { %129 = vst [vmem:[#allocation7] sm:$0xff] %v128_v22 }
 0x19e   :  { %252 = shalt.err (!%p249_p6)
}
 0x19f   :  { %s253_s10 = scalar_lea.hbm %s339_s2, 128 }
 0x1a0   :  { %p254_p7 = scmp.ne.s32.totalorder %s339_s2, %s253_s10  ;;  %p257_p8 = scmp.lt.u32.totalorder %s253_s10, %s339_s2 }
 0x1a2   :  { %p259_p9 = pnand %p257_p8, %p254_p7 }
 0x1a4   :  { %262 = shalt.err (!%p259_p9)
}
 0x1a5   :  { %139 = dma.vmem_to_hbm [thread:$0]  %s137_s6, 128, %s339_s2, [#allocation4]  }
 0x1a6   :  { %267 = dma.done.wait [#allocation4], 128  }
 0x1a7   :  { %268 = vsyncadd [#allocation4], 4294967168 }
 0x1a8   :  { %143 = vsyncpa [#allocation3], 1 }
 0x1a9   :  { %144 = vsyncpa [#allocation6], 1 }
 0x1aa   :  { %145 = vsyncpa [#allocation4], 1 }

</bundles_post_ra>
